<compile_context>
chip_gen: v5e
topology: v5e:2x2
jax: 0.10.0
libtpu: 0.0.40
codegen_flags: <defaults>
</compile_context>

<pallas_src>
import functools

import jax
import jax.numpy as jnp
from jax import lax
from jax.experimental import pallas as pl
from jax.experimental.pallas import tpu as pltpu

LANE = 128          # lane width; batch tiles are multiples of this
MAX_B_TILE = 2048   # cap keeps per-tile activations tiny even on v7x VMEM

# Per batch element, per f-evaluation.
_MACS_PER_ELEM = 2 * 150 + 150 * 50 + 50 * 50 + 50 * 2    # 10400
_TANH_PER_ELEM = 150 + 50 + 50                            # 250


# ---------------------------------------------------------------------------
# Chip-aware configuration helpers
# ---------------------------------------------------------------------------
def _device_kind():
    try:
        return jax.devices()[0].device_kind.lower()
    except Exception:
        return ""


def default_compute_dtype():
    """bf16 on v6e/v7x (EUP/VPU/MXU are bf16-native -> ~2x the binding tanh
    throughput, half the weight DMA); f32 on v5e and older (no bf16 VPU/EUP,
    so bf16 only adds cast traffic)."""
    kind = _device_kind()
    if "v6" in kind or "v7" in kind:
        return jnp.bfloat16
    return jnp.float32


def _num_tensorcores():
    # v7x has 2 TensorCores per chip; earlier generations have 1.
    return 2 if "v7" in _device_kind() else 1


def _pick_b_tile(batch, *, max_tile=MAX_B_TILE, min_tiles=None):
    """Largest 128-multiple tile that divides the padded batch, is <= max_tile
    and (if possible) leaves at least `min_tiles` grid steps so both v7x
    TensorCores get a share of the 'parallel' batch axis."""
    if min_tiles is None:
        min_tiles = _num_tensorcores()
    b_pad = pl.cdiv(batch, LANE) * LANE
    m = b_pad // LANE
    best = 1
    for d in range(1, m + 1):
        if m % d != 0 or d * LANE > max_tile:
            continue
        if (m // d) >= min_tiles:
            best = d
    return b_pad, best * LANE


# ---------------------------------------------------------------------------
# Shared feature-major MLP body (operates on values, not refs).
# yT: (2, Bt) f32;  w*: (out, in) compute dtype;  b*: (out, 1) f32.
# ---------------------------------------------------------------------------
def _mlp_feature_major(yT, w1, b1, w2, b2, w3, b3, w4, b4):
    cdt = w1.dtype  # compute dtype follows the weights (bf16 on v6e/v7x)
    # Layer 1: K=2 contraction -> two broadcast FMAs on the VPU (skip the MXU).
    h = w1[:, 0:1] * yT[0:1, :] + w1[:, 1:2] * yT[1:2, :] + b1
    h = jnp.tanh(h.astype(cdt))                       # EUP in compute dtype
    # Layers 2 & 3: lane-dense MXU matmuls, f32 accumulation, f32 bias add.
    h = jnp.dot(w2, h, preferred_element_type=jnp.float32) + b2
    h = jnp.tanh(h.astype(cdt))
    h = jnp.dot(w3, h, preferred_element_type=jnp.float32) + b3
    h = jnp.tanh(h.astype(cdt))
    # Layer 4: output (2, Bt) is lane-dense; K=50 contraction on the MXU.
    return jnp.dot(w4, h, preferred_element_type=jnp.float32) + b4


# ---------------------------------------------------------------------------
# Kernels
# ---------------------------------------------------------------------------
def odefunc_kernel(y_ref,
                   w1_ref, b1_ref, w2_ref, b2_ref,
                   w3_ref, b3_ref, w4_ref, b4_ref,
                   o_ref):
    """Single evaluation of net(y) for one (2, b_tile) batch tile."""
    out = _mlp_feature_major(
        y_ref[...].astype(jnp.float32),
        w1_ref[...], b1_ref[...], w2_ref[...], b2_ref[...],
        w3_ref[...], b3_ref[...], w4_ref[...], b4_ref[...])
    o_ref[...] = out.astype(o_ref.dtype)


def odefunc_euler_kernel(y_ref,
                         w1_ref, b1_ref, w2_ref, b2_ref,
                         w3_ref, b3_ref, w4_ref, b4_ref,
                         o_ref, *, n_steps, dt, unroll):
    """Fused fixed-step Euler solve: y <- y + dt * net(y), n_steps times,
    all inside one pallas_call.

    Weights/biases are read from their VMEM-resident refs *inside* the loop
    body (cheap vlds; 3 vld slots/cycle) rather than hoisted into values --
    holding all padded weight vregs live across the loop would exceed the
    64-entry vreg file and force spill vst/vld traffic.  Biases stay (out,1)
    and broadcast at the add: with the loop unrolled those broadcasts are VPU
    filler under the EUP-bound tanh, whereas hoisting (out, b_tile) broadcast
    values would reintroduce the live-range pressure we just removed.
    """
    def body(_, yT):
        f = _mlp_feature_major(
            yT,
            w1_ref[...], b1_ref[...], w2_ref[...], b2_ref[...],
            w3_ref[...], b3_ref[...], w4_ref[...], b4_ref[...])
        return yT + dt * f

    yT = lax.fori_loop(0, n_steps, body, y_ref[...].astype(jnp.float32),
                       unroll=unroll)
    o_ref[...] = yT.astype(o_ref.dtype)


# ---------------------------------------------------------------------------
# pallas_call wrappers
# ---------------------------------------------------------------------------
def _const_spec(arr):
    # Same block every grid step -> operand is DMA'd once and stays resident
    # in VMEM across all batch tiles.  (Still double-buffered by the
    # pipeliner: ~0.1 MB total for this net -- negligible, even on v7x.)
    return pl.BlockSpec(arr.shape, lambda i: (0, 0))


def _param_bytes(params):
    return int(sum(w.size * w.dtype.itemsize + b.size * b.dtype.itemsize
                   for (w, b) in params))


def _pallas_run(kernel, yT_pad, params, b_tile, *, n_evals):
    (w1, b1), (w2, b2), (w3, b3), (w4, b4) = params
    Bp = yT_pad.shape[1]
    tile_spec = pl.BlockSpec((2, b_tile), lambda i: (0, i))
    state_bytes = int(yT_pad.size * yT_pad.dtype.itemsize)
    cost = pl.CostEstimate(
        flops=int(2 * _MACS_PER_ELEM * Bp * n_evals),
        transcendentals=int(_TANH_PER_ELEM * Bp * n_evals),
        bytes_accessed=int(2 * state_bytes + _param_bytes(params)))
    return pl.pallas_call(
        kernel,
        out_shape=jax.ShapeDtypeStruct((2, Bp), yT_pad.dtype),
        grid=(Bp // b_tile,),
        in_specs=[tile_spec,
                  _const_spec(w1), _const_spec(b1),
                  _const_spec(w2), _const_spec(b2),
                  _const_spec(w3), _const_spec(b3),
                  _const_spec(w4), _const_spec(b4)],
        out_specs=tile_spec,
        compiler_params=pltpu.CompilerParams(
            dimension_semantics=("parallel",)),
        cost_estimate=cost,
    )(yT_pad, w1, b1, w2, b2, w3, b3, w4, b4)


def _to_feature_major_padded(y, b_pad):
    B = y.shape[0]
    yT = jnp.zeros((2, b_pad), dtype=jnp.float32).at[:, :B].set(
        y.astype(jnp.float32).T)
    return yT, B


def odefunc_forward_fm(t, yT, params, *, b_tile=None):
    """Feature-major forward: yT is (2, B_pad), B_pad a multiple of 128.

    Keep the state in this layout across a whole (external, adaptive) solve
    so the per-f-eval transpose/pad/slice round trip disappears from the hot
    path; convert only at the solve boundary.
    """
    del t
    Bp = yT.shape[1]
    if b_tile is None:
        _, b_tile = _pick_b_tile(Bp)
    return _pallas_run(odefunc_kernel, yT, params, b_tile, n_evals=1)


def odefunc_forward(t, y, params, *, b_tile=None):
    """API-parity forward: matches ODEFunc.forward(t, y); y is (B, 2)."""
    del t
    B = y.shape[0]
    if b_tile is None:
        Bp, b_tile = _pick_b_tile(B)
    else:
        Bp = pl.cdiv(B, b_tile) * b_tile
    yT, B = _to_feature_major_padded(y, Bp)
    outT = _pallas_run(odefunc_kernel, yT, params, b_tile, n_evals=1)
    return outT[:, :B].T


def odefunc_integrate(y0, params, *, n_steps, dt, b_tile=None):
    """Fused Euler integration of dy/dt = net(y) inside one pallas_call."""
    B = y0.shape[0]
    if b_tile is None:
        Bp, b_tile = _pick_b_tile(B)
    else:
        Bp = pl.cdiv(B, b_tile) * b_tile
    yT, B = _to_feature_major_padded(y0, Bp)
    n_steps = int(n_steps)
    # Fully unroll short trajectories (gives the LLO scheduler cross-iteration
    # visibility: layer-1 VPU work of step i+1 overlaps the MXU/EUP drain of
    # step i); partially unroll long ones to bound code size.
    unroll = True if n_steps <= 32 else 8
    kernel = functools.partial(odefunc_euler_kernel,
                               n_steps=n_steps, dt=float(dt), unroll=unroll)
    outT = _pallas_run(kernel, yT, params, b_tile, n_evals=n_steps)
    return outT[:, :B].T


# ---------------------------------------------------------------------------
# Params (PyTorch layout) + pure-JAX references
# ---------------------------------------------------------------------------
def init_params(key, dtype=jnp.float32):
    """normal_(std=0.1) weights, zero biases.  W: (out, in) in `dtype`
    (the kernel's compute dtype follows the weight dtype); b: (out, 1) f32."""
    dims = [(2, 150), (150, 50), (50, 50), (50, 2)]
    params = []
    for (fin, fout) in dims:
        key, wk = jax.random.split(key)
        w = 0.1 * jax.random.normal(wk, (fout, fin), dtype=jnp.float32)
        params.append((w.astype(dtype), jnp.zeros((fout, 1), jnp.float32)))
    return params


def cast_params(params, dtype):
    """Cast weights to `dtype` (e.g. bf16 on v6e/v7x); biases stay f32."""
    return [(w.astype(dtype), b) for (w, b) in params]


def odefunc_forward_ref(t, y, params):
    del t
    h = y
    for i, (w, b) in enumerate(params):
        h = h @ w.astype(jnp.float32).T + b[:, 0]
        if i < len(params) - 1:
            h = jnp.tanh(h)
    return h


def odefunc_integrate_ref(y0, params, *, n_steps, dt):
    def body(_, y):
        return y + dt * odefunc_forward_ref(None, y, params)
    return lax.fori_loop(0, n_steps, body, y0)


# ---------------------------------------------------------------------------
if __name__ == "__main__":
    key = jax.random.PRNGKey(0)
    pkey, ykey = jax.random.split(key)

    params = init_params(pkey)          # f32 weights (exact cross-chip path)

    B = 8
    y = jax.random.normal(ykey, (B, 2), dtype=jnp.float32)
    t = jnp.float32(0.0)                # unused, API parity with forward(t, y)

    # 1) Single forward evaluation (f32 path).
    out = jax.block_until_ready(odefunc_forward(t, y, params))
    ref = odefunc_forward_ref(t, y, params)
    assert out.shape == (B, 2), out.shape
    assert jnp.allclose(out, ref, atol=1e-5, rtol=1e-5), (
        "Pallas forward mismatch vs reference")

    # 2) Feature-major forward (no per-eval transpose/pad round trip).
    Bp_fm, b_tile_fm = _pick_b_tile(B)
    yT_fm, _ = _to_feature_major_padded(y, Bp_fm)
    outT_fm = jax.block_until_ready(
        odefunc_forward_fm(t, yT_fm, params, b_tile=b_tile_fm))
    assert jnp.allclose(outT_fm[:, :B].T, ref, atol=1e-5, rtol=1e-5), (
        "Pallas feature-major forward mismatch vs reference")

    # 3) Non-multiple-of-128 batch (exercises padding / tile picker).
    B2 = 300
    y2 = jax.random.normal(jax.random.PRNGKey(1), (B2, 2), dtype=jnp.float32)
    out2 = jax.block_until_ready(odefunc_forward(t, y2, params))
    ref2 = odefunc_forward_ref(t, y2, params)
    assert out2.shape == (B2, 2), out2.shape
    assert jnp.allclose(out2, ref2, atol=1e-5, rtol=1e-5), (
        "Pallas forward (padded batch) mismatch vs reference")

    # 4) Fused Euler integration (whole time loop inside one pallas_call).
    n_steps, dt = 16, 0.05
    traj = jax.block_until_ready(
        odefunc_integrate(y, params, n_steps=n_steps, dt=dt))
    traj_ref = odefunc_integrate_ref(y, params, n_steps=n_steps, dt=dt)
    assert traj.shape == (B, 2), traj.shape
    assert jnp.allclose(traj, traj_ref, atol=2e-4, rtol=2e-4), (
        "Pallas fused-Euler mismatch vs reference")

    # 5) Chip-default compute dtype path (bf16 weights/activations on
    #    v6e/v7x, f32 elsewhere) -- looser tolerance for bf16 drift.
    cdt = default_compute_dtype()
    params_c = cast_params(params, cdt)
    out_c = jax.block_until_ready(odefunc_forward(t, y, params_c))
    assert jnp.allclose(out_c, ref, atol=3e-2, rtol=3e-2), (
        "Pallas forward (chip-default dtype) mismatch vs reference")
    traj_c = jax.block_until_ready(
        odefunc_integrate(y, params_c, n_steps=n_steps, dt=dt))
    assert jnp.allclose(traj_c, traj_ref, atol=3e-2, rtol=3e-2), (
        "Pallas fused-Euler (chip-default dtype) mismatch vs reference")

    print("KERNEL_OK")
</pallas_src>

<mosaic_0001>
module attributes {stable_mosaic.version = 11 : i64} {
  func.func @odefunc_kernel(%arg0: i32, %arg1: memref<2x128xf32, #tpu.memory_space<vmem>>, %arg2: memref<150x2xf32, #tpu.memory_space<vmem>>, %arg3: memref<150x1xf32, #tpu.memory_space<vmem>>, %arg4: memref<50x150xf32, #tpu.memory_space<vmem>>, %arg5: memref<50x1xf32, #tpu.memory_space<vmem>>, %arg6: memref<50x50xf32, #tpu.memory_space<vmem>>, %arg7: memref<50x1xf32, #tpu.memory_space<vmem>>, %arg8: memref<2x50xf32, #tpu.memory_space<vmem>>, %arg9: memref<2x1xf32, #tpu.memory_space<vmem>>, %arg10: memref<2x128xf32, #tpu.memory_space<vmem>>) attributes {dimension_semantics = [#tpu.dimension_semantics<parallel>], iteration_bounds = array<i64: 1>, scalar_prefetch = 0 : i64, scratch_operands = 0 : i64, tpu.core_type = #tpu.core_type<tc>, window_params = [{transform_indices = @transform_0, window_bounds = array<i64: 2, 128>}, {pipeline_mode = #tpu.pipeline_mode<synchronous>, transform_indices = @transform_1, window_bounds = array<i64: 150, 2>}, {pipeline_mode = #tpu.pipeline_mode<synchronous>, transform_indices = @transform_2, window_bounds = array<i64: 150, 1>}, {pipeline_mode = #tpu.pipeline_mode<synchronous>, transform_indices = @transform_3, window_bounds = array<i64: 50, 150>}, {pipeline_mode = #tpu.pipeline_mode<synchronous>, transform_indices = @transform_4, window_bounds = array<i64: 50, 1>}, {pipeline_mode = #tpu.pipeline_mode<synchronous>, transform_indices = @transform_5, window_bounds = array<i64: 50, 50>}, {pipeline_mode = #tpu.pipeline_mode<synchronous>, transform_indices = @transform_6, window_bounds = array<i64: 50, 1>}, {pipeline_mode = #tpu.pipeline_mode<synchronous>, transform_indices = @transform_7, window_bounds = array<i64: 2, 50>}, {pipeline_mode = #tpu.pipeline_mode<synchronous>, transform_indices = @transform_8, window_bounds = array<i64: 2, 1>}, {transform_indices = @transform_9, window_bounds = array<i64: 2, 128>}]} {
    %c0 = arith.constant 0 : index
    %c0_0 = arith.constant 0 : index
    %0 = vector.load %arg1[%c0, %c0_0] : memref<2x128xf32, #tpu.memory_space<vmem>>, vector<2x128xf32>
    %c0_1 = arith.constant 0 : index
    %c0_2 = arith.constant 0 : index
    %1 = vector.load %arg2[%c0_1, %c0_2] : memref<150x2xf32, #tpu.memory_space<vmem>>, vector<150x2xf32>
    %c0_3 = arith.constant 0 : index
    %c0_4 = arith.constant 0 : index
    %2 = vector.load %arg3[%c0_3, %c0_4] : memref<150x1xf32, #tpu.memory_space<vmem>>, vector<150x1xf32>
    %c0_5 = arith.constant 0 : index
    %c0_6 = arith.constant 0 : index
    %3 = vector.load %arg4[%c0_5, %c0_6] : memref<50x150xf32, #tpu.memory_space<vmem>>, vector<50x150xf32>
    %c0_7 = arith.constant 0 : index
    %c0_8 = arith.constant 0 : index
    %4 = vector.load %arg5[%c0_7, %c0_8] : memref<50x1xf32, #tpu.memory_space<vmem>>, vector<50x1xf32>
    %c0_9 = arith.constant 0 : index
    %c0_10 = arith.constant 0 : index
    %5 = vector.load %arg6[%c0_9, %c0_10] : memref<50x50xf32, #tpu.memory_space<vmem>>, vector<50x50xf32>
    %c0_11 = arith.constant 0 : index
    %c0_12 = arith.constant 0 : index
    %6 = vector.load %arg7[%c0_11, %c0_12] : memref<50x1xf32, #tpu.memory_space<vmem>>, vector<50x1xf32>
    %c0_13 = arith.constant 0 : index
    %c0_14 = arith.constant 0 : index
    %7 = vector.load %arg8[%c0_13, %c0_14] : memref<2x50xf32, #tpu.memory_space<vmem>>, vector<2x50xf32>
    %c0_15 = arith.constant 0 : index
    %c0_16 = arith.constant 0 : index
    %8 = vector.load %arg9[%c0_15, %c0_16] : memref<2x1xf32, #tpu.memory_space<vmem>>, vector<2x1xf32>
    %9 = vector.extract_strided_slice %1 {offsets = [0, 0], sizes = [150, 1], strides = [1, 1]} : vector<150x2xf32> to vector<150x1xf32>
    %10 = vector.extract_strided_slice %0 {offsets = [0, 0], sizes = [1, 128], strides = [1, 1]} : vector<2x128xf32> to vector<1x128xf32>
    %11 = vector.broadcast %9 : vector<150x1xf32> to vector<150x128xf32>
    %12 = vector.broadcast %10 : vector<1x128xf32> to vector<150x128xf32>
    %13 = arith.mulf %11, %12 : vector<150x128xf32>
    %14 = vector.extract_strided_slice %1 {offsets = [0, 1], sizes = [150, 1], strides = [1, 1]} : vector<150x2xf32> to vector<150x1xf32>
    %15 = vector.extract_strided_slice %0 {offsets = [1, 0], sizes = [1, 128], strides = [1, 1]} : vector<2x128xf32> to vector<1x128xf32>
    %16 = vector.broadcast %14 : vector<150x1xf32> to vector<150x128xf32>
    %17 = vector.broadcast %15 : vector<1x128xf32> to vector<150x128xf32>
    %18 = arith.mulf %16, %17 : vector<150x128xf32>
    %19 = arith.addf %13, %18 : vector<150x128xf32>
    %20 = vector.broadcast %2 : vector<150x1xf32> to vector<150x128xf32>
    %21 = arith.addf %19, %20 : vector<150x128xf32>
    %22 = math.tanh %21 : vector<150x128xf32>
    %cst = arith.constant dense<0.000000e+00> : vector<50x128xf32>
    %23 = tpu.matmul %3, %22, %cst {dimension_numbers = #tpu.dot_dimension_numbers<[1], [0], [0], [1], [0, 0, 1, 1], [], []>} : vector<50x150xf32>, vector<150x128xf32>, vector<50x128xf32> -> vector<50x128xf32>
    %24 = vector.broadcast %4 : vector<50x1xf32> to vector<50x128xf32>
    %25 = arith.addf %23, %24 : vector<50x128xf32>
    %26 = math.tanh %25 : vector<50x128xf32>
    %cst_17 = arith.constant dense<0.000000e+00> : vector<50x128xf32>
    %27 = tpu.matmul %5, %26, %cst_17 {dimension_numbers = #tpu.dot_dimension_numbers<[1], [0], [0], [1], [0, 0, 1, 1], [], []>} : vector<50x50xf32>, vector<50x128xf32>, vector<50x128xf32> -> vector<50x128xf32>
    %28 = vector.broadcast %6 : vector<50x1xf32> to vector<50x128xf32>
    %29 = arith.addf %27, %28 : vector<50x128xf32>
    %30 = math.tanh %29 : vector<50x128xf32>
    %cst_18 = arith.constant dense<0.000000e+00> : vector<2x128xf32>
    %31 = tpu.matmul %7, %30, %cst_18 {dimension_numbers = #tpu.dot_dimension_numbers<[1], [0], [0], [1], [0, 0, 1, 1], [], []>} : vector<2x50xf32>, vector<50x128xf32>, vector<2x128xf32> -> vector<2x128xf32>
    %32 = vector.broadcast %8 : vector<2x1xf32> to vector<2x128xf32>
    %33 = arith.addf %31, %32 : vector<2x128xf32>
    %c0_19 = arith.constant 0 : index
    %c0_20 = arith.constant 0 : index
    %34 = vector.load %arg10[%c0_19, %c0_20] : memref<2x128xf32, #tpu.memory_space<vmem>>, vector<2x128xf32>
    tpu.vector_store %arg10[%c0_19, %c0_20], %33 {strides = array<i32>} : memref<2x128xf32, #tpu.memory_space<vmem>>, vector<2x128xf32>,
    return
  }
  func.func @transform_0(%arg0: i32) -> (i32, i32) {
    %c0_i32 = arith.constant 0 : i32
    %c0_i32_0 = arith.constant 0 : i32
    return %c0_i32, %arg0 : i32, i32
  }
  func.func @transform_1(%arg0: i32) -> (i32, i32) {
    %c0_i32 = arith.constant 0 : i32
    %c0_i32_0 = arith.constant 0 : i32
    %c0_i32_1 = arith.constant 0 : i32
    return %c0_i32, %c0_i32_0 : i32, i32
  }
  func.func @transform_2(%arg0: i32) -> (i32, i32) {
    %c0_i32 = arith.constant 0 : i32
    %c0_i32_0 = arith.constant 0 : i32
    %c0_i32_1 = arith.constant 0 : i32
    return %c0_i32, %c0_i32_0 : i32, i32
  }
  func.func @transform_3(%arg0: i32) -> (i32, i32) {
    %c0_i32 = arith.constant 0 : i32
    %c0_i32_0 = arith.constant 0 : i32
    %c0_i32_1 = arith.constant 0 : i32
    return %c0_i32, %c0_i32_0 : i32, i32
  }
  func.func @transform_4(%arg0: i32) -> (i32, i32) {
    %c0_i32 = arith.constant 0 : i32
    %c0_i32_0 = arith.constant 0 : i32
    %c0_i32_1 = arith.constant 0 : i32
    return %c0_i32, %c0_i32_0 : i32, i32
  }
  func.func @transform_5(%arg0: i32) -> (i32, i32) {
    %c0_i32 = arith.constant 0 : i32
    %c0_i32_0 = arith.constant 0 : i32
    %c0_i32_1 = arith.constant 0 : i32
    return %c0_i32, %c0_i32_0 : i32, i32
  }
  func.func @transform_6(%arg0: i32) -> (i32, i32) {
    %c0_i32 = arith.constant 0 : i32
    %c0_i32_0 = arith.constant 0 : i32
    %c0_i32_1 = arith.constant 0 : i32
    return %c0_i32, %c0_i32_0 : i32, i32
  }
  func.func @transform_7(%arg0: i32) -> (i32, i32) {
    %c0_i32 = arith.constant 0 : i32
    %c0_i32_0 = arith.constant 0 : i32
    %c0_i32_1 = arith.constant 0 : i32
    return %c0_i32, %c0_i32_0 : i32, i32
  }
  func.func @transform_8(%arg0: i32) -> (i32, i32) {
    %c0_i32 = arith.constant 0 : i32
    %c0_i32_0 = arith.constant 0 : i32
    %c0_i32_1 = arith.constant 0 : i32
    return %c0_i32, %c0_i32_0 : i32, i32
  }
  func.func @transform_9(%arg0: i32) -> (i32, i32) {
    %c0_i32 = arith.constant 0 : i32
    %c0_i32_0 = arith.constant 0 : i32
    return %c0_i32, %arg0 : i32, i32
  }
}

</mosaic_0001>

<bundles_post_ra>
// kernel: tpu_custom_call.1
= control target key start
LH: loop header
LB: loop body
LE: loop exit
PB: predicated region body
PF: predicated region fallthrough
CT: control target
= control target key end

     0   :  { %v923_v3 = vmov 1   ;;  %v924_v4 = vmov 0   ;;  %s1329_s0 = inlined_call_operand.vmem [shape: f32[2,128], index: 0, kind: input, shape index: {}]   ;;  %s1330_s1 = inlined_call_operand.vmem [shape: f32[150,2], index: 1, kind: input, shape index: {}]   ;;  %s1331_s2 = inlined_call_operand.vmem [shape: f32[150,1], index: 2, kind: input, shape index: {}]   ;;  %s1332_s3 = inlined_call_operand.vmem [shape: f32[50,150], index: 3, kind: input, shape index: {}]   ;;  %s1333_s4 = inlined_call_operand.vmem [shape: f32[50,1], index: 4, kind: input, shape index: {}]   ;;  %s1334_s5 = inlined_call_operand.vmem [shape: f32[50,50], index: 5, kind: input, shape index: {}]   ;;  %s1335_s6 = inlined_call_operand.vmem [shape: f32[50,1], index: 6, kind: input, shape index: {}]   ;;  %s1336_s7 = inlined_call_operand.vmem [shape: f32[2,50], index: 7, kind: input, shape index: {}]   ;;  %s1337_s8 = inlined_call_operand.vmem [shape: f32[2,1], index: 8, kind: input, shape index: {}]   ;;  %s1338_s9 = inlined_call_operand.hbm [shape: f32[2,128], index: 9, kind: output, shape index: {}]  }
   0x1   :  { %v49_v0 = vld [vmem:[%s1330_s1 + $0x78] sm:$0xff]  ;;  %v48_v1 = vld [vmem:[%s1330_s1 + $0x70] sm:$0xff]  ;;  %v47_v2 = vld [vmem:[%s1330_s1 + $0x68] sm:$0xff]  ;;  %807 = vset.pattern.permute.xlu0 %v923_v3  ;;  %810 = vset.pattern.permute.xlu2 %v924_v4 }
   0x2   :  { %808 = vset.pattern.permute.xlu1 %v924_v4  ;;  %285 = vperm.xlu0 %807, %v49_v0  }
   0x3   :  { %181 = vperm.xlu1 %808, %v48_v1   ;;  %176 = vperm.xlu2 %810, %v47_v2  }
   0x4   :  { %14 = vsyncpa [#allocation3], 0  ;;  %v46_v5 = vld [vmem:[%s1330_s1 + $0x60] sm:$0xff]  ;;  %v43_v6 = vld [vmem:[%s1330_s1 + $0x48] sm:$0xff]  ;;  %vm529_vm0 = vcmask 1045504   ;;  %vm507_vm1 = vcmask 179200  }
   0x5   :  { %v68_v7 = vld [vmem:[%s1331_s2 + $0x78] sm:$0xff]  ;;  %v42_v8 = vld [vmem:[%s1330_s1 + $0x40] sm:$0xff]  ;;  %v67_v9 = vld [vmem:[%s1331_s2 + $0x70] sm:$0xff]  ;;  %vm673_vm2 = vcmask 1041408   ;;  %vm651_vm3 = vcmask 408576   ;;  %s925_s18 = smov [#allocation2]  }
   0x6   :  { %v45_v10 = vld [vmem:[%s1330_s1 + $0x58] sm:$0xff]  ;;  %v40_v11 = vld [vmem:[%s1330_s1 + $0x30] sm:$0xff]  ;;  %v66_v13 = vld [vmem:[%s1331_s2 + $0x68] sm:$0xff]  ;;  %s759_s19 = sshll.u32 %s925_s18, 4  ;;  %s761_s21 = sshll.u32 %s1338_s9, 4  ;;  %s760_s19 = int_to_ptr.vmem [resolvable:$true] %s759_s19  ;;  %s762_s21 = int_to_ptr.hbm [resolvable:$true] %s761_s21 }
   0x7   :  { %v52_v12 = vld [vmem:[%s1330_s1 + $0x90] sm:$0x3f]  ;;  %v51_v15 = vld [vmem:[%s1330_s1 + $0x88] sm:$0xff]  ;;  %v50_v16 = vld [vmem:[%s1330_s1 + $0x80] sm:$0xff] }
   0x8   :  { %v44_v14 = vld [vmem:[%s1330_s1 + $0x50] sm:$0xff]  ;;  %v65_v17 = vld [vmem:[%s1331_s2 + $0x60] sm:$0xff]  ;;  %v64_v18 = vld [vmem:[%s1331_s2 + $0x58] sm:$0xff] }
   0x9   :  { %v41_v19 = vld [vmem:[%s1330_s1 + $0x38] sm:$0xff]  ;;  %v71_v20 = vld [vmem:[%s1331_s2 + $0x90] sm:$0x3f]  ;;  %v38_v21 = vld [vmem:[%s1330_s1 + $0x20] sm:$0xff] }
   0xa   :  { %273 = vperm.xlu0 %807, %v46_v5   ;;  %v70_v22 = vld [vmem:[%s1331_s2 + $0x88] sm:$0xff]  ;;  %v63_v23 = vld [vmem:[%s1331_s2 + $0x50] sm:$0xff]  ;;  %v57_v27 = vld [vmem:[%s1331_s2 + $0x20] sm:$0xff] }
   0xb   :  { %809 = vset.pattern.permute.xlu1 %v923_v3  ;;  %811 = vset.pattern.permute.xlu2 %v923_v3  ;;  %v58_v24 = vld [vmem:[%s1331_s2 + $0x28] sm:$0xff]  ;;  %v56_v29 = vld [vmem:[%s1331_s2 + $0x18] sm:$0xff]  ;;  %v69_v30 = vld [vmem:[%s1331_s2 + $0x80] sm:$0xff] }
   0xc   :  { %281 = vperm.xlu1 %809, %v48_v1   ;;  %277 = vperm.xlu2 %811, %v47_v2   ;;  %v62_v26 = vld [vmem:[%s1331_s2 + $0x48] sm:$0xff]  ;;  %v55_v33 = vld [vmem:[%s1331_s2 + $0x10] sm:$0xff]  ;;  %v61_v34 = vld [vmem:[%s1331_s2 + $0x40] sm:$0xff] }
   0xd   :  { %v39_v31 = vld [vmem:[%s1330_s1 + $0x28] sm:$0xff]  ;;  %v60_v37 = vld [vmem:[%s1331_s2 + $0x38] sm:$0xff]  ;;  %v92_v39 = vld [vmem:[%s1333_s4 + $0x30] sm:$0x3] }
   0xe   :  { %v59_v42 = vld [vmem:[%s1331_s2 + $0x30] sm:$0xff]  ;;  %v89_v44 = vld [vmem:[%s1333_s4 + $0x18] sm:$0xff]  ;;  %v86_v48 = vld [vmem:[%s1333_s4] sm:$0xff] }
   0xf   :  { %v37_v47 = vld [vmem:[%s1330_s1 + $0x18] sm:$0xff]  ;;  %v36_v52 = vld [vmem:[%s1330_s1 + $0x10] sm:$0xff]  ;;  %v104_v53 = vld [vmem:[%s1335_s6 + $0x20] sm:$0xff] }
  0x10   :  { %v33_v56 = vld [vmem:[%s1329_s0] sm:$0x3]  ;;  %v35_v57 = vld [vmem:[%s1330_s1 + $0x8] sm:$0xff] }
  0x11   :  { %v101_v59 = vld [vmem:[%s1335_s6 + $0x8] sm:$0xff]  ;;  %v1144_v60 = vperm.slane %v33_v56, 0  ;;  %v1146_v61 = vperm.slane %v33_v56, 1 }
  0x12   :  { %261 = vperm.xlu0 %807, %v43_v6  }
  0x14   :  { %812 = vset.pattern.permute.xlu1 %v924_v4  ;;  %813 = vset.pattern.permute.xlu2 %v924_v4 }
  0x15   :  { %416 = vperm.xlu1 %812, %v68_v7   ;;  %171 = vperm.xlu2 %813, %v46_v5   ;;  %v34_v7 = vld [vmem:[%s1330_s1] sm:$0xff] }
  0x1a   :  { %257 = vperm.xlu0 %807, %v42_v8  }
  0x1d   :  { %411 = vperm.xlu1 %812, %v67_v9   ;;  %166 = vperm.xlu2 %813, %v45_v10  }
  0x22   :  { %249 = vperm.xlu0 %807, %v40_v11  }
  0x25   :  { %814 = vset.pattern.permute.xlu1 %v923_v3  ;;  %815 = vset.pattern.permute.xlu2 %v923_v3 }
  0x26   :  { %269 = vperm.xlu1 %814, %v45_v10   ;;  %297 = vperm.xlu2 %815, %v52_v12  }
  0x2a   :  { %826 = vset.pattern.permute.xlu0 %v924_v4 }
  0x2b   :  { %186 = vperm.xlu0 %826, %v49_v0  }
  0x2e   :  { %816 = vset.pattern.permute.xlu1 %v924_v4  ;;  %817 = vset.pattern.permute.xlu2 %v924_v4 }
  0x2f   :  { %406 = vperm.xlu1 %816, %v66_v13   ;;  %161 = vperm.xlu2 %817, %v44_v14  }
  0x33   :  { %201 = vperm.xlu0 %826, %v52_v12  }
  0x37   :  { %818 = vset.pattern.permute.xlu1 %v923_v3  ;;  %819 = vset.pattern.permute.xlu2 %v923_v3 }
  0x38   :  { %265 = vperm.xlu1 %818, %v44_v14   ;;  %293 = vperm.xlu2 %819, %v51_v15  }
  0x3b   :  { %196 = vperm.xlu0 %826, %v51_v15  }
  0x40   :  { %820 = vset.pattern.permute.xlu1 %v924_v4  ;;  %821 = vset.pattern.permute.xlu2 %v924_v4 }
  0x41   :  { %191 = vperm.xlu2 %821, %v50_v16   ;;  %156 = vperm.xlu1 %820, %v43_v6  }
  0x43   :  { %401 = vperm.xlu0 %826, %v65_v17   ;;  %v53_v17 = vld [vmem:[%s1331_s2] sm:$0xff] }
  0x49   :  { %396 = vperm.xlu2 %821, %v64_v18   ;;  %822 = vset.pattern.permute.xlu1 %v923_v3 }
  0x4a   :  { %289 = vperm.xlu1 %822, %v50_v16  }
  0x4b   :  { %146 = vperm.xlu0 %826, %v41_v19  }
  0x51   :  { %151 = vperm.xlu2 %821, %v42_v8  }
  0x52   :  { %823 = vset.pattern.permute.xlu1 %v924_v4 }
  0x53   :  { %431 = vperm.xlu1 %823, %v71_v20   ;;  %131 = vperm.xlu0 %826, %v38_v21  }
  0x59   :  { %426 = vperm.xlu2 %821, %v70_v22   ;;  %v54_v22 = vld [vmem:[%s1331_s2 + $0x8] sm:$0xff] }
  0x5b   :  { %391 = vperm.xlu1 %823, %v63_v23   ;;  %366 = vperm.xlu0 %826, %v58_v24  }
  0x5d   :  { %v1063_v25 = vpop.permute.xlu2 %176 }
  0x5e   :  { %v218_v2 = vmul.f32 %v1144_v60, %v1063_v25 }
  0x61   :  { %386 = vperm.xlu2 %821, %v62_v26  }
  0x63   :  { %824 = vset.pattern.permute.xlu1 %v923_v3  ;;  %361 = vperm.xlu0 %826, %v57_v27   ;;  %v90_v27 = vld [vmem:[%s1333_s4 + $0x20] sm:$0xff] }
  0x64   :  { %253 = vperm.xlu1 %824, %v41_v19  }
  0x66   :  { %v1072_v28 = vpop.permute.xlu2 %277 }
  0x69   :  { %141 = vperm.xlu2 %821, %v40_v11  }
  0x6b   :  { %356 = vperm.xlu0 %826, %v56_v29  }
  0x6c   :  { %825 = vset.pattern.permute.xlu1 %v924_v4 }
  0x6d   :  { %421 = vperm.xlu1 %825, %v69_v30  }
  0x6f   :  { %v1084_v32 = vpop.permute.xlu2 %171 }
  0x70   :  { %v217_v25 = vmul.f32 %v1144_v60, %v1084_v32  ;;  %v91_v32 = vld [vmem:[%s1333_s4 + $0x28] sm:$0xff] }
  0x71   :  { %136 = vperm.xlu2 %821, %v39_v31  }
  0x73   :  { %351 = vperm.xlu0 %826, %v55_v33  }
  0x74   :  { %v286_v35 = vpop.permute.xlu0 %285 }
  0x75   :  { %v182_v36 = vpop.permute.xlu1 %181  ;;  %381 = vperm.xlu1 %825, %v61_v34   ;;  %v316_v63 = vmul.f32 %v1146_v61, %v286_v35 }
  0x76   :  { %v219_v5 = vmul.f32 %v1144_v60, %v182_v36 }
  0x77   :  { %v1095_v38 = vpop.permute.xlu2 %166 }
  0x79   :  { %376 = vperm.xlu2 %821, %v60_v37   ;;  %v87_v37 = vld [vmem:[%s1333_s4 + $0x8] sm:$0xff] }
  0x7b   :  { %504 = vperm.xlu0 %826, %v92_v39   ;;  %v88_v39 = vld [vmem:[%s1333_s4 + $0x10] sm:$0xff] }
  0x7c   :  { %v1100_v40 = vpop.permute.xlu0 %273 }
  0x7d   :  { %827 = vset.pattern.permute.xlu1 %v923_v3 }
  0x7e   :  { %v282_v41 = vpop.permute.xlu1 %281  ;;  %245 = vperm.xlu1 %827, %v39_v31  }
  0x7f   :  { %v315_v0 = vmul.f32 %v1146_v61, %v282_v41 }
  0x80   :  { %v1106_v43 = vpop.permute.xlu2 %297 }
  0x81   :  { %371 = vperm.xlu2 %821, %v59_v42   ;;  %v334_v8 = vadd.f32 %v315_v0, %v219_v5 }
  0x83   :  { %489 = vperm.xlu0 %826, %v89_v44  }
  0x84   :  { %v1111_v45 = vpop.permute.xlu0 %261 }
  0x86   :  { %241 = vperm.xlu1 %827, %v38_v21  }
  0x87   :  { %v417_v46 = vpop.permute.xlu1 %416 }
  0x89   :  { %829 = vset.pattern.permute.xlu2 %v923_v3  ;;  %v1120_v49 = vpop.permute.xlu2 %161  ;;  %v314_v3 = vmul.f32 %v1146_v61, %v1072_v28  ;;  %v216_v28 = vmul.f32 %v1144_v60, %v1095_v38 }
  0x8a   :  { %237 = vperm.xlu2 %829, %v37_v47  }
  0x8b   :  { %474 = vperm.xlu0 %826, %v86_v48   ;;  %v333_v13 = vadd.f32 %v314_v3, %v218_v2  ;;  %v105_v48 = vld [vmem:[%s1335_s6 + $0x28] sm:$0xff]  ;;  %v215_v2 = vmul.f32 %v1144_v60, %v1120_v49 }
  0x8c   :  { %v1122_v50 = vpop.permute.xlu0 %257 }
  0x8e   :  { %828 = vset.pattern.permute.xlu1 %v924_v4 }
  0x8f   :  { %v412_v51 = vpop.permute.xlu1 %411  ;;  %126 = vperm.xlu1 %828, %v37_v47  }
  0x90   :  { %v448_v11 = vadd.f32 %v412_v51, %v334_v8  ;;  %v319_v51 = vmul.f32 %v1146_v61, %v1106_v43  ;;  %v102_v43 = vld [vmem:[%s1335_s6 + $0x10] sm:$0xff] }
  0x92   :  { %233 = vperm.xlu2 %829, %v36_v52   ;;  %v1131_v54 = vpop.permute.xlu2 %293 }
  0x93   :  { %638 = vperm.xlu0 %826, %v104_v53   ;;  %v318_v41 = vmul.f32 %v1146_v61, %v1131_v54  ;;  %v106_v54 = vld [vmem:[%s1335_s6 + $0x30] sm:$0x3] }
  0x94   :  { %v1133_v55 = vpop.permute.xlu0 %249 }
  0x97   :  { %121 = vperm.xlu1 %828, %v36_v52  }
  0x98   :  { %v270_v58 = vpop.permute.xlu1 %269 }
  0x99   :  { %v312_v26 = vmul.f32 %v1146_v61, %v270_v58 }
  0x9a   :  { %229 = vperm.xlu2 %829, %v35_v57  }
  0x9b   :  { %v1148_v62 = vpop.permute.xlu2 %191  ;;  %623 = vperm.xlu0 %826, %v101_v59   ;;  %v331_v30 = vadd.f32 %v312_v26, %v216_v28 }
  0x9d   :  { %v187_v1 = vpop.permute.xlu0 %186 }
  0x9e   :  { %v220_v6 = vmul.f32 %v1144_v60, %v187_v1  ;;  %v310_v1 = vmul.f32 %v1146_v61, %v1111_v45  ;;  %v108_v45 = vld [vmem:[%s1337_s8] sm:$0x3] }
  0x9f   :  { %116 = vperm.xlu1 %828, %v35_v57  }
  0xa0   :  { %v335_v9 = vadd.f32 %v316_v63, %v220_v6  ;;  %v103_v6 = vld [vmem:[%s1335_s6 + $0x18] sm:$0xff] }
  0xa1   :  { %v407_v10 = vpop.permute.xlu1 %406 }
  0xa2   :  { %v449_v12 = vadd.f32 %v417_v46, %v335_v9  ;;  %225 = vperm.xlu2 %829, %v34_v7   ;;  %v447_v15 = vadd.f32 %v407_v10, %v333_v13 }
  0xa3   :  { %v397_v14 = vpop.permute.xlu2 %396 }
  0xa4   :  { %831 = vtanh.f32 %v449_v12  ;;  %v445_v35 = vadd.f32 %v397_v14, %v331_v30  ;;  %v100_v12 = vld [vmem:[%s1335_s6] sm:$0xff] }
  0xa5   :  { %v202_v16 = vpop.permute.xlu0 %201  ;;  %833 = vtanh.f32 %v448_v11 }
  0xa6   :  { %835 = vtanh.f32 %v447_v15  ;;  %v223_v47 = vmul.f32 %v1144_v60, %v202_v16 }
  0xa7   :  { %111 = vperm.xlu1 %828, %v34_v7  }
  0xa8   :  { %v338_v53 = vadd.f32 %v319_v51, %v223_v47  ;;  %v75_v47 = vld [vmem:[%s1332_s3 + $0x18] sm:$0xff] }
  0xaa   :  { %v832_v18 = vpop.eup %831  ;;  %v266_v19 = vpop.permute.xlu1 %265  ;;  %830 = vset.pattern.permute.xlu2 %v924_v4  ;;  %v313_v4 = vmul.f32 %v1146_v61, %v1100_v40 }
  0xab   :  { %v1165_v20 = vpop.permute.xlu2 %151  ;;  %341 = vperm.xlu2 %830, %v53_v17   ;;  %533 = vmatpush.msra.mxu0 %v832_v18  ;;  %v834_v21 = vpop.eup %833  ;;  %v311_v59 = vmul.f32 %v1146_v61, %v266_v19 }
  0xac   :  { %788 = vmatpush.msra.mxu3 %v832_v18  ;;  %v836_v24 = vpop.eup %835  ;;  %v332_v31 = vadd.f32 %v313_v4, %v217_v25  ;;  %v221_v18 = vmul.f32 %v1144_v60, %v1148_v62  ;;  %v309_v4 = vmul.f32 %v1146_v61, %v1122_v50  ;;  %v213_v26 = vmul.f32 %v1144_v60, %v1165_v20  ;;  %v73_v20 = vld [vmem:[%s1332_s3 + $0x8] sm:$0xff] }
  0xad   :  { %v197_v23 = vpop.permute.xlu0 %196  ;;  %534 = vmatpush.msra.mxu0 %v834_v21  ;;  %v330_v5 = vadd.f32 %v311_v59, %v215_v2  ;;  %v307_v62 = vmul.f32 %v1146_v61, %v1133_v55  ;;  %v77_v59 = vld [vmem:[%s1332_s3 + $0x28] sm:$0xff] }
  0xae   :  { %789 = vmatpush.msra.mxu3 %v834_v21  ;;  %v222_v42 = vmul.f32 %v1144_v60, %v197_v23  ;;  %v328_v30 = vadd.f32 %v309_v4, %v213_v26  ;;  %v85_v4 = vld [vmem:[%s1332_s3 + $0x68] sm:$0x3] }
  0xaf   :  { %346 = vperm.xlu1 %828, %v54_v22   ;;  %535 = vmatpush.msra.mxu0 %v836_v24 }
  0xb0   :  { %790 = vmatpush.msra.mxu3 %v836_v24  ;;  %v337_v52 = vadd.f32 %v318_v41, %v222_v42 }
  0xb3   :  { %v157_v29 = vpop.permute.xlu1 %156  ;;  %494 = vperm.xlu2 %830, %v90_v27   ;;  %v427_v33 = vpop.permute.xlu2 %426 }
  0xb4   :  { %v451_v57 = vadd.f32 %v427_v33, %v337_v52  ;;  %v214_v63 = vmul.f32 %v1144_v60, %v157_v29 }
  0xb5   :  { %v402_v34 = vpop.permute.xlu0 %401 }
  0xb6   :  { %v446_v36 = vadd.f32 %v402_v34, %v332_v31  ;;  %v329_v3 = vadd.f32 %v310_v1, %v214_v63 }
  0xb7   :  { %499 = vperm.xlu1 %828, %v91_v32  }
  0xb8   :  { %837 = vtanh.f32 %v446_v36 }
  0xb9   :  { %839 = vtanh.f32 %v445_v35 }
  0xbb   :  { %479 = vperm.xlu2 %830, %v87_v37   ;;  %v387_v44 = vpop.permute.xlu2 %386 }
  0xbc   :  { %v290_v38 = vpop.permute.xlu1 %289  ;;  %v443_v9 = vadd.f32 %v387_v44, %v329_v3 }
  0xbd   :  { %v317_v16 = vmul.f32 %v1146_v61, %v290_v38  ;;  %v147_v17 = vpop.permute.xlu0 %146 }
  0xbe   :  { %v838_v40 = vpop.eup %837  ;;  %v212_v23 = vmul.f32 %v1144_v60, %v147_v17  ;;  %v83_v17 = vld [vmem:[%s1332_s3 + $0x58] sm:$0xff] }
  0xbf   :  { %484 = vperm.xlu1 %828, %v88_v39   ;;  %536 = vmatpush.msra.mxu0 %v838_v40  ;;  %v840_v46 = vpop.eup %839  ;;  %v336_v21 = vadd.f32 %v317_v16, %v221_v18 }
  0xc0   :  { %791 = vmatpush.msra.mxu3 %v838_v40 }
  0xc1   :  { %537 = vmatpush.msra.mxu0 %v840_v46 }
  0xc2   :  { %792 = vmatpush.msra.mxu3 %v840_v46 }
  0xc3   :  { %643 = vperm.xlu2 %830, %v105_v48   ;;  %v142_v0 = vpop.permute.xlu2 %141 }
  0xc4   :  { %v211_v27 = vmul.f32 %v1144_v60, %v142_v0 }
  0xc5   :  { %v432_v56 = vpop.permute.xlu1 %431  ;;  %v132_v29 = vpop.permute.xlu0 %131 }
  0xc6   :  { %v452_v58 = vadd.f32 %v432_v56, %v338_v53  ;;  %v326_v35 = vadd.f32 %v307_v62, %v211_v27  ;;  %v209_v51 = vmul.f32 %v1144_v60, %v132_v29 }
  0xc7   :  { %648 = vperm.xlu1 %828, %v106_v54  }
  0xc8   :  { %841 = vtanh.f32 %v452_v58 }
  0xc9   :  { %843 = vtanh.f32 %v451_v57 }
  0xcb   :  { %628 = vperm.xlu2 %830, %v102_v43   ;;  %v137_v49 = vpop.permute.xlu2 %136 }
  0xcc   :  { %v210_v39 = vmul.f32 %v1144_v60, %v137_v49 }
  0xcd   :  { %v392_v7 = vpop.permute.xlu1 %391  ;;  %v367_v37 = vpop.permute.xlu0 %366 }
  0xce   :  { %v842_v8 = vpop.eup %841  ;;  %v444_v10 = vadd.f32 %v392_v7, %v330_v5 }
  0xcf   :  { %633 = vperm.xlu1 %828, %v103_v6   ;;  %770 = vmatpush.msk.msra.mxu1 %vm529_vm0, %v842_v8  ;;  %v844_v11 = vpop.eup %843  ;;  %v79_v6 = vld [vmem:[%s1332_s3 + $0x38] sm:$0xff] }
  0xd0   :  { %845 = vtanh.f32 %v444_v10 }
  0xd1   :  { %585 = vmatpush.msra.mxu1 %v844_v11  ;;  %847 = vtanh.f32 %v443_v9 }
  0xd3   :  { %724 = vperm.xlu2 %830, %v108_v45   ;;  %v377_v19 = vpop.permute.xlu2 %376 }
  0xd5   :  { %v362_v52 = vpop.permute.xlu0 %361 }
  0xd6   :  { %v846_v13 = vpop.eup %845  ;;  %v254_v14 = vpop.permute.xlu1 %253 }
  0xd7   :  { %618 = vperm.xlu1 %828, %v100_v12   ;;  %538 = vmatpush.msra.mxu0 %v846_v13  ;;  %v848_v15 = vpop.eup %847  ;;  %v308_v24 = vmul.f32 %v1146_v61, %v254_v14  ;;  %v81_v14 = vld [vmem:[%s1332_s3 + $0x48] sm:$0xff] }
  0xd8   :  { %793 = vmatpush.msra.mxu3 %v846_v13 }
  0xd9   :  { %539 = vmatpush.msra.mxu0 %v848_v15  ;;  %v327_v28 = vadd.f32 %v308_v24, %v212_v23 }
  0xda   :  { %794 = vmatpush.msra.mxu3 %v848_v15 }
  0xdb   :  { %v372_v31 = vpop.permute.xlu2 %371  ;;  %v441_v34 = vadd.f32 %v377_v19, %v327_v28 }
  0xdc   :  { %v440_v50 = vadd.f32 %v372_v31, %v326_v35  ;;  %v78_v35 = vld [vmem:[%s1332_s3 + $0x30] sm:$0xff] }
  0xdd   :  { %v357_v1 = vpop.permute.xlu0 %356 }
  0xdf   :  { %v422_v22 = vpop.permute.xlu1 %421 }
  0xe0   :  { %v450_v25 = vadd.f32 %v422_v22, %v336_v21 }
  0xe2   :  { %849 = vtanh.f32 %v450_v25 }
  0xe4   :  { %v238_v53 = vpop.permute.xlu2 %237 }
  0xe5   :  { %v304_v63 = vmul.f32 %v1146_v61, %v238_v53  ;;  %v352_v45 = vpop.permute.xlu0 %351 }
  0xe7   :  { %v382_v32 = vpop.permute.xlu1 %381 }
  0xe8   :  { %v850_v33 = vpop.eup %849  ;;  %v442_v36 = vadd.f32 %v382_v32, %v328_v30  ;;  %v74_v32 = vld [vmem:[%s1332_s3 + $0x10] sm:$0xff] }
  0xe9   :  { %586 = vmatpush.msra.mxu1 %v850_v33  ;;  %v84_v33 = vld [vmem:[%s1332_s3 + $0x60] sm:$0x3] }
  0xea   :  { %851 = vtanh.f32 %v442_v36  ;;  %771 = vmatmul.msk.f32.vlgmr.msra.gmra.mxu1 %vm507_vm1, %v73_v20  ;;  %v80_v36 = vld [vmem:[%s1332_s3 + $0x40] sm:$0xff] }
  0xeb   :  { %853 = vtanh.f32 %v441_v34  ;;  %v76_v34 = vld [vmem:[%s1332_s3 + $0x20] sm:$0xff] }
  0xec   :  { %855 = vtanh.f32 %v440_v50  ;;  %v234_v2 = vpop.permute.xlu2 %233 }
  0xed   :  { %v303_v9 = vmul.f32 %v1146_v61, %v234_v2 }
  0xf0   :  { %v852_v55 = vpop.eup %851  ;;  %v246_v38 = vpop.permute.xlu1 %245 }
  0xf1   :  { %v306_v40 = vmul.f32 %v1146_v61, %v246_v38  ;;  %540 = vmatpush.msra.mxu0 %v852_v55  ;;  %795 = vmatpush.msra.mxu3 %v852_v55  ;;  %v854_v41 = vpop.eup %853 }
  0xf2   :  { %v856_v44 = vpop.eup %855  ;;  %772 = vmatmul.msk.f32.gmra.mxu1 %vm507_vm1, %v75_v47 }
  0xf3   :  { %v325_v42 = vadd.f32 %v306_v40, %v210_v39  ;;  %541 = vmatpush.msra.mxu0 %v854_v41  ;;  %796 = vmatpush.msra.mxu3 %v854_v41 }
  0xf4   :  { %v230_v49 = vpop.permute.xlu2 %229 }
  0xf5   :  { %v439_v46 = vadd.f32 %v367_v37, %v325_v42  ;;  %542 = vmatpush.msra.mxu0 %v856_v44  ;;  %797 = vmatpush.msra.mxu3 %v856_v44  ;;  %v302_v24 = vmul.f32 %v1146_v61, %v230_v49 }
  0xf7   :  { %857 = vtanh.f32 %v439_v46  ;;  %v505_v46 = vpop.permute.xlu0 %504 }
  0xf8   :  { %v242_v48 = vpop.permute.xlu1 %241 }
  0xf9   :  { %v305_v54 = vmul.f32 %v1146_v61, %v242_v48 }
  0xfa   :  { %773 = vmatmul.msk.f32.gmra.mxu1 %vm507_vm1, %v77_v59 }
  0xfb   :  { %v324_v56 = vadd.f32 %v305_v54, %v209_v51 }
  0xfc   :  { %v226_v18 = vpop.permute.xlu2 %225 }
  0xfd   :  { %v858_v57 = vpop.eup %857  ;;  %v438_v58 = vadd.f32 %v362_v52, %v324_v56  ;;  %v301_v22 = vmul.f32 %v1146_v61, %v226_v18  ;;  %v82_v61 = vld [vmem:[%s1332_s3 + $0x50] sm:$0xff] }
  0xfe   :  { %543 = vmatpush.msra.mxu0 %v858_v57  ;;  %798 = vmatpush.msra.mxu3 %v858_v57 }
  0xff   :  { %859 = vtanh.f32 %v438_v58 }
 0x101   :  { %v127_v43 = vpop.permute.xlu1 %126 }
 0x102   :  { %v208_v0 = vmul.f32 %v1144_v60, %v127_v43  ;;  %774 = vmatmul.msk.f32.gmra.mxu1 %vm507_vm1, %v79_v6 }
 0x104   :  { %v323_v3 = vadd.f32 %v304_v63, %v208_v0  ;;  %v490_v63 = vpop.permute.xlu0 %489 }
 0x105   :  { %v860_v5 = vpop.eup %859  ;;  %v342_v27 = vpop.permute.xlu2 %341 }
 0x106   :  { %v437_v7 = vadd.f32 %v357_v1, %v323_v3  ;;  %544 = vmatpush.msra.mxu0 %v860_v5  ;;  %799 = vmatpush.msra.mxu3 %v860_v5 }
 0x108   :  { %861 = vtanh.f32 %v437_v7 }
 0x109   :  { %v122_v8 = vpop.permute.xlu1 %121 }
 0x10a   :  { %v207_v10 = vmul.f32 %v1144_v60, %v122_v8  ;;  %775 = vmatmul.msk.f32.gmra.mxu1 %vm507_vm1, %v81_v14 }
 0x10c   :  { %v322_v11 = vadd.f32 %v303_v9, %v207_v10  ;;  %v475_v10 = vpop.permute.xlu0 %474 }
 0x10d   :  { %v495_v57 = vpop.permute.xlu2 %494 }
 0x10e   :  { %v862_v12 = vpop.eup %861  ;;  %v436_v13 = vadd.f32 %v352_v45, %v322_v11 }
 0x10f   :  { %545 = vmatpush.msra.mxu0 %v862_v12  ;;  %800 = vmatpush.msra.mxu3 %v862_v12 }
 0x110   :  { %863 = vtanh.f32 %v436_v13 }
 0x111   :  { %v117_v15 = vpop.permute.xlu1 %116 }
 0x112   :  { %776 = vmatmul.msk.f32.gmra.mxu1 %vm507_vm1, %v83_v17  ;;  %v206_v23 = vmul.f32 %v1144_v60, %v117_v15  ;;  %v93_v17 = vld [vmem:[%s1334_s5] sm:$0xff] }
 0x114   :  { %v321_v26 = vadd.f32 %v302_v24, %v206_v23  ;;  %v97_v23 = vld [vmem:[%s1334_s5 + $0x20] sm:$0xff]  ;;  %v98_v24 = vld [vmem:[%s1334_s5 + $0x28] sm:$0xff] }
 0x115   :  { %v480_v6 = vpop.permute.xlu2 %479 }
 0x116   :  { %v864_v16 = vpop.eup %863 }
 0x117   :  { %546 = vmatpush.msra.mxu0 %v864_v16  ;;  %801 = vmatpush.msra.mxu3 %v864_v16 }
 0x119   :  { %v112_v19 = vpop.permute.xlu1 %111 }
 0x11a   :  { %v205_v21 = vmul.f32 %v1144_v60, %v112_v19  ;;  %777 = vmatmul.msk.f32.gmra.mxu1 %vm507_vm1, %v85_v4  ;;  %v72_v60 = vld [vmem:[%s1332_s3] sm:$0xff]  ;;  %v94_v19 = vld [vmem:[%s1334_s5 + $0x8] sm:$0xff] }
 0x11c   :  { %v320_v25 = vadd.f32 %v301_v22, %v205_v21  ;;  %v95_v21 = vld [vmem:[%s1334_s5 + $0x10] sm:$0xff]  ;;  %v96_v22 = vld [vmem:[%s1334_s5 + $0x18] sm:$0xff] }
 0x11e   :  { %v434_v29 = vadd.f32 %v342_v27, %v320_v25  ;;  %v99_v25 = vld [vmem:[%s1334_s5 + $0x30] sm:$0x3] }
 0x121   :  { %v347_v28 = vpop.permute.xlu1 %346 }
 0x122   :  { %v435_v62 = vadd.f32 %v347_v28, %v321_v26 }
 0x124   :  { %865 = vtanh.f32 %v435_v62 }
 0x125   :  { %867 = vtanh.f32 %v434_v29 }
 0x129   :  { %v500_v44 = vpop.permute.xlu1 %499 }
 0x12a   :  { %v866_v30 = vpop.eup %865 }
 0x12b   :  { %547 = vmatpush.msra.mxu0 %v866_v30  ;;  %802 = vmatpush.msra.mxu3 %v866_v30  ;;  %v868_v31 = vpop.eup %867 }
 0x12d   :  { %548 = vmatpush.msra.mxu0 %v868_v31  ;;  %803 = vmatpush.msra.mxu3 %v868_v31 }
 0x12e   :  { %549 = vmatmul.f32.vlgmr.msra.gmra.mxu0 %v72_v60  ;;  %564 = vmatmul.f32.vlgmr.msra.gmra.mxu3 %v82_v61  ;;  %v644_v60 = vpop.permute.xlu2 %643  ;;  %v639_v61 = vpop.permute.xlu0 %638 }
 0x131   :  { %v485_v1 = vpop.permute.xlu1 %484 }
 0x136   :  { %552 = vmatmul.f32.gmra.mxu0 %v74_v32  ;;  %567 = vmatmul.f32.gmra.mxu3 %v84_v33 }
 0x139   :  { %v649_v62 = vpop.permute.xlu1 %648 }
 0x13e   :  { %555 = vmatmul.f32.gmra.mxu0 %v76_v34 }
 0x141   :  { %v634_v31 = vpop.permute.xlu1 %633 }
 0x146   :  { %558 = vmatmul.f32.gmra.mxu0 %v78_v35 }
 0x14e   :  { %561 = vmatmul.f32.gmra.mxu0 %v80_v36 }
 0x167   :  { %v588_v50 = vpop.f32.mrf.mxu1 }
 0x16f   :  { %v591_v20 = vpop.f32.mrf.mxu1 }
 0x177   :  { %v594_v37 = vpop.f32.mrf.mxu1 }
 0x17f   :  { %v597_v55 = vpop.f32.mrf.mxu1 }
 0x187   :  { %v600_v38 = vpop.f32.mrf.mxu1 }
 0x18f   :  { %v603_v40 = vpop.f32.mrf.mxu1 }
 0x197   :  { %v606_v51 = vpop.f32.mrf.mxu1 }
 0x1ab   :  { %v550_v39 = vpop.f32.mrf.mxu0 }
 0x1ac   :  { %v551_v11 = vadd.f32 %v550_v39, %v475_v10  ;;  %v619_v39 = vpop.permute.xlu1 %618 }
 0x1ae   :  { %v589_v12 = vadd.f32 %v588_v50, %v551_v11  ;;  %v629_v50 = vpop.permute.xlu2 %628 }
 0x1b1   :  { %v565_v41 = vpop.f32.mrf.mxu3 }
 0x1b2   :  { %v566_v47 = vadd.f32 %v565_v41, %v500_v44 }
 0x1b3   :  { %v553_v42 = vpop.f32.mrf.mxu0 }
 0x1b4   :  { %v604_v54 = vadd.f32 %v603_v40, %v566_v47  ;;  %v554_v7 = vadd.f32 %v553_v42, %v480_v6 }
 0x1b6   :  { %v592_v49 = vadd.f32 %v591_v20, %v554_v7 }
 0x1b9   :  { %v568_v48 = vpop.f32.mrf.mxu3 }
 0x1ba   :  { %v569_v52 = vadd.f32 %v568_v48, %v505_v46  ;;  %v107_v48 = vld [vmem:[%s1336_s7] sm:$0x3] }
 0x1bb   :  { %v556_v53 = vpop.f32.mrf.mxu0 }
 0x1bc   :  { %v607_v56 = vadd.f32 %v606_v51, %v569_v52  ;;  %v557_v3 = vadd.f32 %v556_v53, %v485_v1  ;;  %v725_v52 = vpop.permute.xlu2 %724 }
 0x1be   :  { %869 = vtanh.f32 %v607_v56  ;;  %v595_v45 = vadd.f32 %v594_v37, %v557_v3  ;;  %v624_v37 = vpop.permute.xlu0 %623 }
 0x1bf   :  { %871 = vtanh.f32 %v604_v54 }
 0x1c3   :  { %v559_v58 = vpop.f32.mrf.mxu0 }
 0x1c4   :  { %v870_v59 = vpop.eup %869  ;;  %v560_v0 = vadd.f32 %v559_v58, %v490_v63 }
 0x1c5   :  { %778 = vmatpush.msk.msra.mxu2 %vm673_vm2, %v870_v59  ;;  %v872_v43 = vpop.eup %871 }
 0x1c6   :  { %v598_v8 = vadd.f32 %v597_v55, %v560_v0 }
 0x1c7   :  { %687 = vmatpush.msra.mxu2 %v872_v43 }
 0x1cb   :  { %v562_v2 = vpop.f32.mrf.mxu0 }
 0x1cc   :  { %v563_v5 = vadd.f32 %v562_v2, %v495_v57 }
 0x1ce   :  { %v601_v9 = vadd.f32 %v600_v38, %v563_v5 }
 0x1d0   :  { %873 = vtanh.f32 %v601_v9 }
 0x1d1   :  { %875 = vtanh.f32 %v598_v8 }
 0x1d2   :  { %877 = vtanh.f32 %v595_v45 }
 0x1d3   :  { %879 = vtanh.f32 %v592_v49 }
 0x1d4   :  { %881 = vtanh.f32 %v589_v12 }
 0x1d6   :  { %v874_v13 = vpop.eup %873 }
 0x1d7   :  { %688 = vmatpush.msra.mxu2 %v874_v13  ;;  %v876_v14 = vpop.eup %875 }
 0x1d8   :  { %v878_v15 = vpop.eup %877 }
 0x1d9   :  { %689 = vmatpush.msra.mxu2 %v876_v14  ;;  %v880_v16 = vpop.eup %879 }
 0x1da   :  { %v882_v18 = vpop.eup %881 }
 0x1db   :  { %690 = vmatpush.msra.mxu2 %v878_v15 }
 0x1dd   :  { %691 = vmatpush.msra.mxu2 %v880_v16 }
 0x1df   :  { %692 = vmatpush.msra.mxu2 %v882_v18 }
 0x1e0   :  { %779 = vmatmul.msk.f32.vlgmr.msra.gmra.mxu2 %vm651_vm3, %v93_v17 }
 0x1e8   :  { %780 = vmatmul.msk.f32.gmra.mxu2 %vm651_vm3, %v94_v19 }
 0x1f0   :  { %781 = vmatmul.msk.f32.gmra.mxu2 %vm651_vm3, %v95_v21 }
 0x1f8   :  { %782 = vmatmul.msk.f32.gmra.mxu2 %vm651_vm3, %v96_v22 }
 0x200   :  { %783 = vmatmul.msk.f32.gmra.mxu2 %vm651_vm3, %v97_v23 }
 0x208   :  { %784 = vmatmul.msk.f32.gmra.mxu2 %vm651_vm3, %v98_v24 }
 0x210   :  { %785 = vmatmul.msk.f32.gmra.mxu2 %vm651_vm3, %v99_v25 }
 0x263   :  { %v694_v4 = vpop.f32.mrf.mxu2 }
 0x264   :  { %v695_v41 = vadd.f32 %v694_v4, %v619_v39 }
 0x26b   :  { %v697_v26 = vpop.f32.mrf.mxu2 }
 0x26c   :  { %v698_v38 = vadd.f32 %v697_v26, %v624_v37 }
 0x273   :  { %v700_v27 = vpop.f32.mrf.mxu2 }
 0x274   :  { %v701_v20 = vadd.f32 %v700_v27, %v629_v50 }
 0x27b   :  { %v703_v28 = vpop.f32.mrf.mxu2 }
 0x27c   :  { %v704_v36 = vadd.f32 %v703_v28, %v634_v31 }
 0x283   :  { %v706_v29 = vpop.f32.mrf.mxu2 }
 0x284   :  { %v707_v35 = vadd.f32 %v706_v29, %v639_v61 }
 0x28b   :  { %v709_v30 = vpop.f32.mrf.mxu2 }
 0x28c   :  { %v710_v33 = vadd.f32 %v709_v30, %v644_v60 }
 0x293   :  { %v712_v32 = vpop.f32.mrf.mxu2 }
 0x294   :  { %v713_v34 = vadd.f32 %v712_v32, %v649_v62 }
 0x296   :  { %883 = vtanh.f32 %v713_v34 }
 0x297   :  { %885 = vtanh.f32 %v710_v33 }
 0x298   :  { %887 = vtanh.f32 %v707_v35 }
 0x299   :  { %889 = vtanh.f32 %v704_v36 }
 0x29a   :  { %891 = vtanh.f32 %v701_v20 }
 0x29b   :  { %893 = vtanh.f32 %v698_v38 }
 0x29c   :  { %v884_v55 = vpop.eup %883  ;;  %895 = vtanh.f32 %v695_v41 }
 0x29d   :  { %786 = vmatpush.msk.msrb.mxu3 %vm673_vm2, %v884_v55  ;;  %v886_v40 = vpop.eup %885 }
 0x29e   :  { %v888_v42 = vpop.eup %887 }
 0x29f   :  { %743 = vmatpush.msrb.mxu3 %v886_v40  ;;  %v890_v44 = vpop.eup %889 }
 0x2a0   :  { %v892_v46 = vpop.eup %891 }
 0x2a1   :  { %744 = vmatpush.msrb.mxu3 %v888_v42  ;;  %v894_v47 = vpop.eup %893 }
 0x2a2   :  { %v896_v51 = vpop.eup %895 }
 0x2a3   :  { %745 = vmatpush.msrb.mxu3 %v890_v44 }
 0x2a5   :  { %746 = vmatpush.msrb.mxu3 %v892_v46 }
 0x2a7   :  { %747 = vmatpush.msrb.mxu3 %v894_v47 }
 0x2a9   :  { %748 = vmatpush.msrb.mxu3 %v896_v51 }
 0x2aa   :  { %787 = vmatmul.msk.f32.vlgmr.msrb.gmra.mxu3 %vm651_vm3, %v107_v48 }
 0x32d   :  { %v750_v53 = vpop.f32.mrf.mxu3 }
 0x32e   :  { %v751_v54 = vadd.f32 %v750_v53, %v725_v52 }
 0x330   :  { %753 = vst [vmem:[#allocation2] sm:$0x3] %v751_v54 }
 0x331   :  { %764 = dma.vmem_to_hbm [thread:$0]  %s760_s19, 32, %s762_s21, [#allocation3]  }
 0x332   :  { %921 = dma.done.wait [#allocation3], 32  }
 0x333   :  { %922 = vsyncadd [#allocation3], 4294967264 }
 0x334   :  { %769 = vsyncpa [#allocation3], 1 }

</bundles_post_ra>
